<compile_context>
chip_gen: v7x
topology: tpu7x:2x2x1
jax: 0.10.0
libtpu: 0.0.40
codegen_flags: <defaults>
</compile_context>

<pallas_src>
import jax
import jax.numpy as jnp
from jax.experimental import pallas as pl
from jax.experimental.pallas import tpu as pltpu


# ----------------------------- Pallas kernel --------------------------------
def _fused_encoder_kernel(x_ref, w1_ref, b1_ref, w2_ref, b2_ref, w3_ref, b3_ref,
                          o_ref):
    # All operands are whole-array VMEM tiles; intermediates never leave chip.
    a = x_ref[...]                                                     # (N, 64)
    a = jnp.maximum(
        jnp.dot(a, w1_ref[...], preferred_element_type=jnp.float32) + b1_ref[...],
        0.0)                                                           # (N, 256)
    a = jnp.maximum(
        jnp.dot(a, w2_ref[...], preferred_element_type=jnp.float32) + b2_ref[...],
        0.0)                                                           # (N, 256)
    a = jnp.maximum(
        jnp.dot(a, w3_ref[...], preferred_element_type=jnp.float32) + b3_ref[...],
        0.0)                                                           # (N, 256)
    o_ref[...] = a.astype(o_ref.dtype)


def _fused_encoder(x_flat, packed):
    """x_flat: (N, Cin0*L0); packed: [(B, bias_row) x 3] -> (N, C_last*L_last)."""
    (w1, b1), (w2, b2), (w3, b3) = packed
    n = x_flat.shape[0]
    d_out = w3.shape[1]

    def full_spec(arr):
        nd = arr.ndim
        return pl.BlockSpec(arr.shape, lambda i, _nd=nd: (0,) * _nd)

    return pl.pallas_call(
        _fused_encoder_kernel,
        out_shape=jax.ShapeDtypeStruct((n, d_out), x_flat.dtype),
        grid_spec=pltpu.PrefetchScalarGridSpec(
            num_scalar_prefetch=0,
            grid=(1,),  # single grid step: the whole encoder fits one VMEM tile
            in_specs=[full_spec(x_flat),
                      full_spec(w1), full_spec(b1),
                      full_spec(w2), full_spec(b2),
                      full_spec(w3), full_spec(b3)],
            out_specs=pl.BlockSpec((n, d_out), lambda i: (0, 0)),
        ),
        compiler_params=pltpu.CompilerParams(
            dimension_semantics=("arbitrary",)),
    )(x_flat, w1, b1, w2, b2, w3, b3)


# ----------------------- weight folding (done once, offline) -----------------
def _fold_conv1d(w, b, lin, *, stride=2, padding=1):
    """Fold Conv1d weights into a dense (Cin*Lin, Cout*Lout) matrix + bias row.

    Only touches the tiny weight tensors (<= 32*16*4 elems); nothing on the
    activation data path.
    """
    cout, cin, k = w.shape
    lout = (lin + 2 * padding - k) // stride + 1
    t = jnp.arange(lin)                       # unpadded input position
    l = jnp.arange(lout)                      # output position
    j = t[:, None] + padding - stride * l[None, :]          # tap index, (Lin, Lout)
    valid = (j >= 0) & (j < k)
    jc = jnp.clip(j, 0, k - 1)
    wg = w[:, :, jc]                                         # (Cout, Cin, Lin, Lout)
    wg = jnp.where(valid[None, None], wg, 0.0)
    bmat = jnp.transpose(wg, (1, 2, 0, 3)).reshape(cin * lin, cout * lout)
    brow = jnp.repeat(b, lout)[None, :]                      # (1, Cout*Lout)
    return bmat.astype(jnp.float32), brow.astype(jnp.float32), lout


def pack_encoder_params(params, L):
    packed = []
    lin = L
    for w, b in params:
        bm, br, lin = _fold_conv1d(w, b, lin)
        packed.append((bm, br))
    return packed


# ------------------------------- Encoder -------------------------------------
def init_encoder_params(key):
    """Conv1d(1->8), Conv1d(8->16), Conv1d(16->32), all k=4 s=2 p=1."""
    shapes = [(8, 1, 4), (16, 8, 4), (32, 16, 4)]
    params = []
    for i, (cout, cin, k) in enumerate(shapes):
        kw, kb = jax.random.split(jax.random.fold_in(key, i))
        bound = 1.0 / jnp.sqrt(cin * k)
        w = jax.random.uniform(kw, (cout, cin, k), jnp.float32, -bound, bound)
        b = jax.random.uniform(kb, (cout,), jnp.float32, -bound, bound)
        params.append((w, b))
    return params


@jax.jit
def encoder_forward(x, packed):
    n, cin, L = x.shape
    y = _fused_encoder(x.reshape(n, cin * L), packed)        # (N, Cout_last*Lout_last)
    lout = L
    for _ in packed:
        lout = (lout + 2 * 1 - 4) // 2 + 1
    cout = y.shape[1] // lout
    return y.reshape(n, cout, lout)                          # back to NCL


# ------------------------------ reference ------------------------------------
def encoder_forward_ref(x, params):
    for w, b in params:
        y = jax.lax.conv_general_dilated(
            x, w, window_strides=(2,), padding=((1, 1),),
            dimension_numbers=("NCH", "OIH", "NCH"))
        x = jax.nn.relu(y + b[None, :, None])
    return x


# -------------------------------- main ----------------------------------------
if __name__ == "__main__":
    key = jax.random.PRNGKey(0)
    k_params, k_x = jax.random.split(key)

    params = init_encoder_params(k_params)

    # Small input consistent with the module: (batch=2, channels=1, length=64).
    x = jax.random.normal(k_x, (2, 1, 64), dtype=jnp.float32)

    packed = pack_encoder_params(params, x.shape[-1])        # one-time weight folding

    out = encoder_forward(x, packed)
    out = jax.block_until_ready(out)

    assert out.shape == (2, 32, 8), out.shape

    ref = encoder_forward_ref(x, params)
    assert jnp.allclose(out, ref, atol=1e-4, rtol=1e-4), \
        float(jnp.max(jnp.abs(out - ref)))

    print("KERNEL_OK")
</pallas_src>

<mosaic_0001>
module attributes {stable_mosaic.version = 11 : i64} {
  func.func @_fused_encoder_kernel(%arg0: i32, %arg1: memref<2x64xf32, #tpu.memory_space<vmem>>, %arg2: memref<64x256xf32, #tpu.memory_space<vmem>>, %arg3: memref<1x256xf32, #tpu.memory_space<vmem>>, %arg4: memref<256x256xf32, #tpu.memory_space<vmem>>, %arg5: memref<1x256xf32, #tpu.memory_space<vmem>>, %arg6: memref<256x256xf32, #tpu.memory_space<vmem>>, %arg7: memref<1x256xf32, #tpu.memory_space<vmem>>, %arg8: memref<2x256xf32, #tpu.memory_space<vmem>>) attributes {dimension_semantics = [#tpu.dimension_semantics<arbitrary>], iteration_bounds = array<i64: 1>, scalar_prefetch = 0 : i64, scratch_operands = 0 : i64, tpu.core_type = #tpu.core_type<tc>, window_params = [{pipeline_mode = #tpu.pipeline_mode<synchronous>, transform_indices = @transform_0, window_bounds = array<i64: 2, 64>}, {pipeline_mode = #tpu.pipeline_mode<synchronous>, transform_indices = @transform_1, window_bounds = array<i64: 64, 256>}, {pipeline_mode = #tpu.pipeline_mode<synchronous>, transform_indices = @transform_2, window_bounds = array<i64: 1, 256>}, {pipeline_mode = #tpu.pipeline_mode<synchronous>, transform_indices = @transform_3, window_bounds = array<i64: 256, 256>}, {pipeline_mode = #tpu.pipeline_mode<synchronous>, transform_indices = @transform_4, window_bounds = array<i64: 1, 256>}, {pipeline_mode = #tpu.pipeline_mode<synchronous>, transform_indices = @transform_5, window_bounds = array<i64: 256, 256>}, {pipeline_mode = #tpu.pipeline_mode<synchronous>, transform_indices = @transform_6, window_bounds = array<i64: 1, 256>}, {pipeline_mode = #tpu.pipeline_mode<synchronous>, transform_indices = @transform_7, window_bounds = array<i64: 2, 256>}]} {
    %c0 = arith.constant 0 : index
    %c0_0 = arith.constant 0 : index
    %0 = vector.load %arg1[%c0, %c0_0] : memref<2x64xf32, #tpu.memory_space<vmem>>, vector<2x64xf32>
    %c0_1 = arith.constant 0 : index
    %c0_2 = arith.constant 0 : index
    %1 = vector.load %arg2[%c0_1, %c0_2] : memref<64x256xf32, #tpu.memory_space<vmem>>, vector<64x256xf32>
    %cst = arith.constant dense<0.000000e+00> : vector<2x256xf32>
    %2 = tpu.matmul %0, %1, %cst {dimension_numbers = #tpu.dot_dimension_numbers<[1], [0], [0], [1], [0, 0, 1, 1], [], []>} : vector<2x64xf32>, vector<64x256xf32>, vector<2x256xf32> -> vector<2x256xf32>
    %c0_3 = arith.constant 0 : index
    %c0_4 = arith.constant 0 : index
    %3 = vector.load %arg3[%c0_3, %c0_4] : memref<1x256xf32, #tpu.memory_space<vmem>>, vector<1x256xf32>
    %4 = vector.broadcast %3 : vector<1x256xf32> to vector<2x256xf32>
    %5 = arith.addf %2, %4 : vector<2x256xf32>
    %cst_5 = arith.constant 0.000000e+00 : f32
    %6 = vector.broadcast %cst_5 : f32 to vector<2x256xf32>
    %7 = arith.maximumf %5, %6 : vector<2x256xf32>
    %c0_6 = arith.constant 0 : index
    %c0_7 = arith.constant 0 : index
    %8 = vector.load %arg4[%c0_6, %c0_7] : memref<256x256xf32, #tpu.memory_space<vmem>>, vector<256x256xf32>
    %cst_8 = arith.constant dense<0.000000e+00> : vector<2x256xf32>
    %9 = tpu.matmul %7, %8, %cst_8 {dimension_numbers = #tpu.dot_dimension_numbers<[1], [0], [0], [1], [0, 0, 1, 1], [], []>} : vector<2x256xf32>, vector<256x256xf32>, vector<2x256xf32> -> vector<2x256xf32>
    %c0_9 = arith.constant 0 : index
    %c0_10 = arith.constant 0 : index
    %10 = vector.load %arg5[%c0_9, %c0_10] : memref<1x256xf32, #tpu.memory_space<vmem>>, vector<1x256xf32>
    %11 = vector.broadcast %10 : vector<1x256xf32> to vector<2x256xf32>
    %12 = arith.addf %9, %11 : vector<2x256xf32>
    %cst_11 = arith.constant 0.000000e+00 : f32
    %13 = vector.broadcast %cst_11 : f32 to vector<2x256xf32>
    %14 = arith.maximumf %12, %13 : vector<2x256xf32>
    %c0_12 = arith.constant 0 : index
    %c0_13 = arith.constant 0 : index
    %15 = vector.load %arg6[%c0_12, %c0_13] : memref<256x256xf32, #tpu.memory_space<vmem>>, vector<256x256xf32>
    %cst_14 = arith.constant dense<0.000000e+00> : vector<2x256xf32>
    %16 = tpu.matmul %14, %15, %cst_14 {dimension_numbers = #tpu.dot_dimension_numbers<[1], [0], [0], [1], [0, 0, 1, 1], [], []>} : vector<2x256xf32>, vector<256x256xf32>, vector<2x256xf32> -> vector<2x256xf32>
    %c0_15 = arith.constant 0 : index
    %c0_16 = arith.constant 0 : index
    %17 = vector.load %arg7[%c0_15, %c0_16] : memref<1x256xf32, #tpu.memory_space<vmem>>, vector<1x256xf32>
    %18 = vector.broadcast %17 : vector<1x256xf32> to vector<2x256xf32>
    %19 = arith.addf %16, %18 : vector<2x256xf32>
    %cst_17 = arith.constant 0.000000e+00 : f32
    %20 = vector.broadcast %cst_17 : f32 to vector<2x256xf32>
    %21 = arith.maximumf %19, %20 : vector<2x256xf32>
    %c0_18 = arith.constant 0 : index
    %c0_19 = arith.constant 0 : index
    %22 = vector.load %arg8[%c0_18, %c0_19] : memref<2x256xf32, #tpu.memory_space<vmem>>, vector<2x256xf32>
    tpu.vector_store %arg8[%c0_18, %c0_19], %21 {strides = array<i32>} : memref<2x256xf32, #tpu.memory_space<vmem>>, vector<2x256xf32>,
    return
  }
  func.func @transform_0(%arg0: i32) -> (i32, i32) {
    %c0_i32 = arith.constant 0 : i32
    %c0_i32_0 = arith.constant 0 : i32
    %c0_i32_1 = arith.constant 0 : i32
    return %c0_i32, %c0_i32_0 : i32, i32
  }
  func.func @transform_1(%arg0: i32) -> (i32, i32) {
    %c0_i32 = arith.constant 0 : i32
    %c0_i32_0 = arith.constant 0 : i32
    %c0_i32_1 = arith.constant 0 : i32
    return %c0_i32, %c0_i32_0 : i32, i32
  }
  func.func @transform_2(%arg0: i32) -> (i32, i32) {
    %c0_i32 = arith.constant 0 : i32
    %c0_i32_0 = arith.constant 0 : i32
    %c0_i32_1 = arith.constant 0 : i32
    return %c0_i32, %c0_i32_0 : i32, i32
  }
  func.func @transform_3(%arg0: i32) -> (i32, i32) {
    %c0_i32 = arith.constant 0 : i32
    %c0_i32_0 = arith.constant 0 : i32
    %c0_i32_1 = arith.constant 0 : i32
    return %c0_i32, %c0_i32_0 : i32, i32
  }
  func.func @transform_4(%arg0: i32) -> (i32, i32) {
    %c0_i32 = arith.constant 0 : i32
    %c0_i32_0 = arith.constant 0 : i32
    %c0_i32_1 = arith.constant 0 : i32
    return %c0_i32, %c0_i32_0 : i32, i32
  }
  func.func @transform_5(%arg0: i32) -> (i32, i32) {
    %c0_i32 = arith.constant 0 : i32
    %c0_i32_0 = arith.constant 0 : i32
    %c0_i32_1 = arith.constant 0 : i32
    return %c0_i32, %c0_i32_0 : i32, i32
  }
  func.func @transform_6(%arg0: i32) -> (i32, i32) {
    %c0_i32 = arith.constant 0 : i32
    %c0_i32_0 = arith.constant 0 : i32
    %c0_i32_1 = arith.constant 0 : i32
    return %c0_i32, %c0_i32_0 : i32, i32
  }
  func.func @transform_7(%arg0: i32) -> (i32, i32) {
    %c0_i32 = arith.constant 0 : i32
    %c0_i32_0 = arith.constant 0 : i32
    %c0_i32_1 = arith.constant 0 : i32
    return %c0_i32, %c0_i32_0 : i32, i32
  }
}

</mosaic_0001>

<bundles_post_ra>
// kernel: encoder_forward.1
= control target key start
LH: loop header
LB: loop body
LE: loop exit
PB: predicated region body
PF: predicated region fallthrough
CT: control target
= control target key end

     0   :  { %12 = vsyncpa [#allocation3], 0  ;;  %s824_s0 = inlined_call_operand.vmem [shape: f32[2,64], index: 0, kind: input, shape index: {}]   ;;  %s825_s1 = inlined_call_operand.hbm [shape: f32[64,256], index: 1, kind: input, shape index: {}]   ;;  %s826_s2 = inlined_call_operand.vmem [shape: f32[1,256], index: 2, kind: input, shape index: {}]   ;;  %s827_s3 = inlined_call_operand.hbm [shape: f32[256,256], index: 3, kind: input, shape index: {}]   ;;  %s828_s4 = inlined_call_operand.vmem [shape: f32[1,256], index: 4, kind: input, shape index: {}]   ;;  %s829_s5 = inlined_call_operand.hbm [shape: f32[256,256], index: 5, kind: input, shape index: {}]   ;;  %s830_s6 = inlined_call_operand.vmem [shape: f32[1,256], index: 6, kind: input, shape index: {}]   ;;  %s831_s7 = inlined_call_operand.vmem [shape: f32[2,256], index: 7, kind: output, shape index: {}]  }
   0x1   :  { %13 = vsyncpa [#allocation5], 0  ;;  %s711_s24 = smov [#allocation4]   ;;  %s712_s26 = smov [#allocation2]  }
   0x2   :  { %s35_s25 = sshll.u32 %s711_s24, 4  ;;  %s21_s27 = sshll.u32 %s712_s26, 4  ;;  %s36_s25 = int_to_ptr.vmem [resolvable:$true] %s35_s25  ;;  %s757_s27 = int_to_ptr.vmem [resolvable:$true] %s21_s27 }
   0x3   :  { %s641_s30 = scalar_lea.hbm %s827_s3, 8192 }
   0x4   :  { %p642_p0 = scmp.ne.s32.totalorder %s827_s3, %s641_s30  ;;  %p645_p1 = scmp.lt.u32.totalorder %s641_s30, %s827_s3 }
   0x6   :  { %p647_p2 = pnand %p645_p1, %p642_p0 }
   0x8   :  { %650 = shalt.err (!%p647_p2)
}
   0x9   :  { %s651_s12 = scalar_lea.vmem %s36_s25, 8192  ;;  %p656_p4 = scmp.lt.s32.totalorder %s36_s25, %s36_s25 }
   0xa   :  { %p652_p3 = scmp.ne.s32.totalorder %s36_s25, %s651_s12  ;;  %p657_p5 = scmp.lt.s32.totalorder %s651_s12, %s651_s12 }
   0xc   :  { %p658_p6 = por %p657_p5, %p656_p4 }
   0xe   :  { %p659_p7 = pnand %p658_p6, %p652_p3 }
  0x10   :  { %662 = shalt.err (!%p659_p7)
}
  0x11   :  { %s713_s13 = smov 256   ;;  %s714_s14 = smov 16  }
  0x12   :  { %41 = dma.hbm_to_vmem [thread:$0]  %s827_s3, 8192, %s36_s25, [#allocation5], %s713_s13, %s713_s13, %s714_s14  }
  0x13   :  { %s663_s19 = scalar_lea.hbm %s825_s1, 2048 }
  0x14   :  { %p664_p8 = scmp.ne.s32.totalorder %s825_s1, %s663_s19  ;;  %p667_p9 = scmp.lt.u32.totalorder %s663_s19, %s825_s1 }
  0x16   :  { %p669_p10 = pnand %p667_p9, %p664_p8 }
  0x18   :  { %672 = shalt.err (!%p669_p10)
}
  0x19   :  { %s673_s24 = scalar_lea.vmem %s757_s27, 2048  ;;  %p678_p12 = scmp.lt.s32.totalorder %s757_s27, %s757_s27 }
  0x1a   :  { %p674_p11 = scmp.ne.s32.totalorder %s757_s27, %s673_s24  ;;  %p679_p13 = scmp.lt.s32.totalorder %s673_s24, %s673_s24 }
  0x1c   :  { %p680_p0 = por %p679_p13, %p678_p12 }
  0x1e   :  { %p681_p1 = pnand %p680_p0, %p674_p11 }
  0x20   :  { %684 = shalt.err (!%p681_p1)
}
  0x21   :  { %27 = dma.hbm_to_vmem [thread:$0]  %s825_s1, 2048, %s757_s27, [#allocation3], %s713_s13, %s713_s13, %s714_s14  }
  0x22   :  { %s715_s26 = smov [#allocation6]   ;;  %s685_s8 = scalar_lea.hbm %s829_s5, 8192 }
  0x23   :  { %s49_s28 = sshll.u32 %s715_s26, 4  ;;  %p686_p2 = scmp.ne.s32.totalorder %s829_s5, %s685_s8  ;;  %s50_s28 = int_to_ptr.vmem [resolvable:$true] %s49_s28 }
  0x24   :  { %p689_p3 = scmp.lt.u32.totalorder %s685_s8, %s829_s5 }
  0x26   :  { %p691_p4 = pnand %p689_p3, %p686_p2 }
  0x28   :  { %694 = shalt.err (!%p691_p4)
}
  0x29   :  { %s695_s15 = scalar_lea.vmem %s50_s28, 8192  ;;  %p700_p6 = scmp.lt.s32.totalorder %s50_s28, %s50_s28 }
  0x2a   :  { %p696_p5 = scmp.ne.s32.totalorder %s50_s28, %s695_s15  ;;  %p701_p7 = scmp.lt.s32.totalorder %s695_s15, %s695_s15 }
  0x2c   :  { %p702_p8 = por %p701_p7, %p700_p6 }
  0x2e   :  { %p703_p9 = pnand %p702_p8, %p696_p5 }
  0x30   :  { %706 = shalt.err (!%p703_p9)
}
  0x31   :  { %55 = dma.hbm_to_vmem [thread:$0]  %s829_s5, 8192, %s50_s28, [#allocation5], %s713_s13, %s713_s13, %s714_s14  }
  0x32   :  { %707 = dma.done.wait [#allocation3], 2048  }
  0x33   :  { %708 = vsyncadd [#allocation3], 4294965248 }
  0x34   :  { %709 = dma.done.wait [#allocation5], 16384  }
  0x35   :  { %710 = vsyncadd [#allocation5], 4294950912  ;;  %v716_v0 = vmov 0.0   ;;  %v69_v1 = vld [vmem:[#allocation2 + $0x8] sm:$0xff]  ;;  %v71_v2 = vld [vmem:[#allocation2 + $0x18] sm:$0xff]  ;;  %vm96_vm0 = vcmask 523264  }
  0x36   :  { %164 = vmatprep.mubr.f32.mxu0 %v716_v0  ;;  %v68_v3 = vld [vmem:[#allocation2] sm:$0xff]  ;;  %v491_v4 = vpack.c.bf16 %v71_v2, %v69_v1  ;;  %v70_v5 = vld [vmem:[#allocation2 + $0x10] sm:$0xff]  ;;  %v73_v6 = vld [vmem:[#allocation2 + $0x28] sm:$0xff] }
  0x37   :  { %v75_v7 = vld [vmem:[#allocation2 + $0x38] sm:$0xff]  ;;  %v493_v8 = vpack.c.bf16 %v70_v5, %v68_v3  ;;  %v72_v10 = vld [vmem:[#allocation2 + $0x20] sm:$0xff]  ;;  %v74_v11 = vld [vmem:[#allocation2 + $0x30] sm:$0xff] }
  0x38   :  { %v495_v9 = vpack.c.bf16 %v75_v7, %v73_v6  ;;  %v77_v12 = vld [vmem:[#allocation2 + $0x48] sm:$0xff]  ;;  %492 = vmatprep.subr.bf16.mxu0 %v491_v4  ;;  %v79_v13 = vld [vmem:[#allocation2 + $0x58] sm:$0xff]  ;;  %v497_v14 = vpack.c.bf16 %v74_v11, %v72_v10  ;;  %v76_v15 = vld [vmem:[#allocation2 + $0x40] sm:$0xff] }
  0x39   :  { %494 = vmatpush1.bf16.msra.mxu0 %v493_v8  ;;  %v78_v16 = vld [vmem:[#allocation2 + $0x50] sm:$0xff]  ;;  %v499_v17 = vpack.c.bf16 %v79_v13, %v77_v12  ;;  %v81_v18 = vld [vmem:[#allocation2 + $0x68] sm:$0xff]  ;;  %v83_v19 = vld [vmem:[#allocation2 + $0x78] sm:$0xff] }
  0x3a   :  { %496 = vmatprep.subr.bf16.mxu0 %v495_v9  ;;  %v174_v20 = vld [vmem:[#allocation4 + $0x8] sm:$0xff]  ;;  %v176_v21 = vld [vmem:[#allocation4 + $0x18] sm:$0xff]  ;;  %v173_v22 = vld [vmem:[#allocation4] sm:$0xff]  ;;  %v501_v29 = vpack.c.bf16 %v78_v16, %v76_v15  ;;  %v503_v34 = vpack.c.bf16 %v83_v19, %v81_v18 }
  0x3b   :  { %v175_v23 = vld [vmem:[#allocation4 + $0x10] sm:$0xff]  ;;  %v507_v24 = vpack.c.bf16 %v176_v21, %v174_v20  ;;  %v178_v26 = vld [vmem:[#allocation4 + $0x28] sm:$0xff]  ;;  %v180_v27 = vld [vmem:[#allocation4 + $0x38] sm:$0xff] }
  0x3c   :  { %v509_v25 = vpack.c.bf16 %v175_v23, %v173_v22  ;;  %v177_v28 = vld [vmem:[#allocation4 + $0x20] sm:$0xff]  ;;  %v511_v30 = vpack.c.bf16 %v180_v27, %v178_v26  ;;  %v179_v31 = vld [vmem:[#allocation4 + $0x30] sm:$0xff]  ;;  %v182_v32 = vld [vmem:[#allocation4 + $0x48] sm:$0xff] }
  0x3d   :  { %498 = vmatpush1.bf16.msra.mxu0 %v497_v14  ;;  %v184_v33 = vld [vmem:[#allocation4 + $0x58] sm:$0xff]  ;;  %v80_v35 = vld [vmem:[#allocation2 + $0x60] sm:$0xff]  ;;  %v82_v36 = vld [vmem:[#allocation2 + $0x70] sm:$0xff]  ;;  %508 = vmatprep.subr.bf16.mxu1 %v507_v24  ;;  %v513_v37 = vpack.c.bf16 %v179_v31, %v177_v28 }
  0x3e   :  { %500 = vmatprep.subr.bf16.mxu0 %v499_v17  ;;  %510 = vmatpush1.bf16.msra.mxu1 %v509_v25  ;;  %v515_v38 = vpack.c.bf16 %v184_v33, %v182_v32  ;;  %v181_v39 = vld [vmem:[#allocation4 + $0x40] sm:$0xff]  ;;  %v183_v40 = vld [vmem:[#allocation4 + $0x50] sm:$0xff]  ;;  %v505_v41 = vpack.c.bf16 %v82_v36, %v80_v35  ;;  %v186_v42 = vld [vmem:[#allocation4 + $0x68] sm:$0xff] }
  0x3f   :  { %512 = vmatprep.subr.bf16.mxu1 %v511_v30  ;;  %v188_v43 = vld [vmem:[#allocation4 + $0x78] sm:$0xff]  ;;  %v517_v44 = vpack.c.bf16 %v183_v40, %v181_v39  ;;  %v185_v46 = vld [vmem:[#allocation4 + $0x60] sm:$0xff]  ;;  %v187_v47 = vld [vmem:[#allocation4 + $0x70] sm:$0xff] }
  0x40   :  { %v519_v45 = vpack.c.bf16 %v188_v43, %v186_v42  ;;  %v67_v48 = vld [vmem:[%s824_s0] sm:$0x3]  ;;  %v190_v49 = vld [vmem:[#allocation4 + $0x88] sm:$0xff]  ;;  %v192_v50 = vld [vmem:[#allocation4 + $0x98] sm:$0xff]  ;;  %v521_v51 = vpack.c.bf16 %v187_v47, %v185_v46 }
  0x41   :  { %502 = vmatpush1.bf16.msra.mxu0 %v501_v29  ;;  %v523_v52 = vpack.c.bf16 %v192_v50, %v190_v49  ;;  %v189_v53 = vld [vmem:[#allocation4 + $0x80] sm:$0xff]  ;;  %v191_v54 = vld [vmem:[#allocation4 + $0x90] sm:$0xff]  ;;  %v194_v55 = vld [vmem:[#allocation4 + $0xa8] sm:$0xff] }
  0x42   :  { %504 = vmatprep.subr.bf16.mxu0 %v503_v34  ;;  %514 = vmatpush1.bf16.msra.mxu1 %v513_v37  ;;  %v196_v56 = vld [vmem:[#allocation4 + $0xb8] sm:$0xff]  ;;  %v525_v57 = vpack.c.bf16 %v191_v54, %v189_v53  ;;  %v193_v59 = vld [vmem:[#allocation4 + $0xa0] sm:$0xff]  ;;  %v195_v60 = vld [vmem:[#allocation4 + $0xb0] sm:$0xff] }
  0x43   :  { %516 = vmatprep.subr.bf16.mxu1 %v515_v38  ;;  %v527_v58 = vpack.c.bf16 %v196_v56, %v194_v55  ;;  %v198_v61 = vld [vmem:[#allocation4 + $0xc8] sm:$0xff]  ;;  %v200_v62 = vld [vmem:[#allocation4 + $0xd8] sm:$0xff]  ;;  %v529_v63 = vpack.c.bf16 %v195_v60, %v193_v59  ;;  %v197_v1 = vld [vmem:[#allocation4 + $0xc0] sm:$0xff] }
  0x44   :  { %v531_v0 = vpack.c.bf16 %v200_v62, %v198_v61  ;;  %v199_v2 = vld [vmem:[#allocation4 + $0xd0] sm:$0xff]  ;;  %v202_v3 = vld [vmem:[#allocation4 + $0xe8] sm:$0xff]  ;;  %v204_v4 = vld [vmem:[#allocation4 + $0xf8] sm:$0xff] }
  0x45   :  { %506 = vmatpush1.bf16.msra.mxu0 %v505_v41  ;;  %v533_v5 = vpack.c.bf16 %v199_v2, %v197_v1  ;;  %v535_v6 = vpack.c.bf16 %v204_v4, %v202_v3  ;;  %v201_v7 = vld [vmem:[#allocation4 + $0xe0] sm:$0xff]  ;;  %v203_v8 = vld [vmem:[#allocation4 + $0xf0] sm:$0xff]  ;;  %v206_v9 = vld [vmem:[#allocation4 + $0x108] sm:$0xff] }
  0x46   :  { %518 = vmatpush1.bf16.msra.mxu1 %v517_v44  ;;  %v208_v10 = vld [vmem:[#allocation4 + $0x118] sm:$0xff]  ;;  %v537_v11 = vpack.c.bf16 %v203_v8, %v201_v7  ;;  %v205_v13 = vld [vmem:[#allocation4 + $0x100] sm:$0xff]  ;;  %v207_v14 = vld [vmem:[#allocation4 + $0x110] sm:$0xff] }
  0x47   :  { %520 = vmatprep.subr.bf16.mxu1 %v519_v45  ;;  %v539_v12 = vpack.c.bf16 %v208_v10, %v206_v9  ;;  %v210_v15 = vld [vmem:[#allocation4 + $0x128] sm:$0xff]  ;;  %v212_v16 = vld [vmem:[#allocation4 + $0x138] sm:$0xff]  ;;  %v541_v17 = vpack.c.bf16 %v207_v14, %v205_v13  ;;  %v209_v19 = vld [vmem:[#allocation4 + $0x120] sm:$0xff] }
  0x48   :  { %489 = vmatmul.mubr.msk.f32.vlgmr.msra.gmra.mrb[0].mxu0 %vm96_vm0, %v67_v48  ;;  %v543_v18 = vpack.c.bf16 %v212_v16, %v210_v15  ;;  %v211_v20 = vld [vmem:[#allocation4 + $0x130] sm:$0xff]  ;;  %v214_v21 = vld [vmem:[#allocation4 + $0x148] sm:$0xff]  ;;  %v216_v22 = vld [vmem:[#allocation4 + $0x158] sm:$0xff] }
  0x49   :  { %v545_v23 = vpack.c.bf16 %v211_v20, %v209_v19  ;;  %v547_v24 = vpack.c.bf16 %v216_v22, %v214_v21  ;;  %v213_v25 = vld [vmem:[#allocation4 + $0x140] sm:$0xff]  ;;  %v215_v26 = vld [vmem:[#allocation4 + $0x150] sm:$0xff]  ;;  %v218_v27 = vld [vmem:[#allocation4 + $0x168] sm:$0xff] }
  0x4a   :  { %522 = vmatpush1.bf16.msra.mxu1 %v521_v51  ;;  %v220_v28 = vld [vmem:[#allocation4 + $0x178] sm:$0xff]  ;;  %v549_v29 = vpack.c.bf16 %v215_v26, %v213_v25  ;;  %v217_v31 = vld [vmem:[#allocation4 + $0x160] sm:$0xff]  ;;  %v219_v32 = vld [vmem:[#allocation4 + $0x170] sm:$0xff] }
  0x4b   :  { %524 = vmatprep.subr.bf16.mxu1 %v523_v52  ;;  %v551_v30 = vpack.c.bf16 %v220_v28, %v218_v27  ;;  %v222_v33 = vld [vmem:[#allocation4 + $0x188] sm:$0xff]  ;;  %v224_v34 = vld [vmem:[#allocation4 + $0x198] sm:$0xff]  ;;  %v553_v35 = vpack.c.bf16 %v219_v32, %v217_v31  ;;  %v221_v37 = vld [vmem:[#allocation4 + $0x180] sm:$0xff] }
  0x4c   :  { %v555_v36 = vpack.c.bf16 %v224_v34, %v222_v33  ;;  %v223_v38 = vld [vmem:[#allocation4 + $0x190] sm:$0xff]  ;;  %v226_v39 = vld [vmem:[#allocation4 + $0x1a8] sm:$0xff]  ;;  %v228_v40 = vld [vmem:[#allocation4 + $0x1b8] sm:$0xff] }
  0x4d   :  { %v557_v41 = vpack.c.bf16 %v223_v38, %v221_v37  ;;  %v559_v42 = vpack.c.bf16 %v228_v40, %v226_v39  ;;  %v225_v43 = vld [vmem:[#allocation4 + $0x1a0] sm:$0xff]  ;;  %v227_v44 = vld [vmem:[#allocation4 + $0x1b0] sm:$0xff]  ;;  %v230_v45 = vld [vmem:[#allocation4 + $0x1c8] sm:$0xff] }
  0x4e   :  { %526 = vmatpush1.bf16.msra.mxu1 %v525_v57  ;;  %v232_v46 = vld [vmem:[#allocation4 + $0x1d8] sm:$0xff]  ;;  %v561_v47 = vpack.c.bf16 %v227_v44, %v225_v43  ;;  %v229_v49 = vld [vmem:[#allocation4 + $0x1c0] sm:$0xff]  ;;  %v231_v50 = vld [vmem:[#allocation4 + $0x1d0] sm:$0xff] }
  0x4f   :  { %528 = vmatprep.subr.bf16.mxu1 %v527_v58  ;;  %v563_v48 = vpack.c.bf16 %v232_v46, %v230_v45  ;;  %v565_v51 = vpack.c.bf16 %v231_v50, %v229_v49  ;;  %v234_v52 = vld [vmem:[#allocation4 + $0x1e8] sm:$0xff]  ;;  %v236_v53 = vld [vmem:[#allocation4 + $0x1f8] sm:$0xff]  ;;  %v233_v55 = vld [vmem:[#allocation4 + $0x1e0] sm:$0xff] }
  0x50   :  { %v567_v54 = vpack.c.bf16 %v236_v53, %v234_v52  ;;  %v235_v56 = vld [vmem:[#allocation4 + $0x1f0] sm:$0xff]  ;;  %v323_v58 = vld [vmem:[#allocation6 + $0x8] sm:$0xff]  ;;  %v325_v59 = vld [vmem:[#allocation6 + $0x18] sm:$0xff] }
  0x51   :  { %v569_v57 = vpack.c.bf16 %v235_v56, %v233_v55  ;;  %v322_v60 = vld [vmem:[#allocation6] sm:$0xff]  ;;  %v571_v61 = vpack.c.bf16 %v325_v59, %v323_v58  ;;  %v324_v62 = vld [vmem:[#allocation6 + $0x10] sm:$0xff]  ;;  %v363_v53 = vld [vmem:[#allocation6 + $0x148] sm:$0xff] }
  0x52   :  { %530 = vmatpush1.bf16.msra.mxu1 %v529_v63  ;;  %v327_v63 = vld [vmem:[#allocation6 + $0x28] sm:$0xff]  ;;  %v573_v1 = vpack.c.bf16 %v324_v62, %v322_v60  ;;  %v326_v3 = vld [vmem:[#allocation6 + $0x20] sm:$0xff]  ;;  %v328_v4 = vld [vmem:[#allocation6 + $0x30] sm:$0xff] }
  0x53   :  { %532 = vmatprep.subr.bf16.mxu1 %v531_v0  ;;  %v329_v0 = vld [vmem:[#allocation6 + $0x38] sm:$0xff]  ;;  %572 = vmatprep.subr.bf16.mxu0 %v571_v61  ;;  %v577_v7 = vpack.c.bf16 %v328_v4, %v326_v3  ;;  %v330_v9 = vld [vmem:[#allocation6 + $0x40] sm:$0xff]  ;;  %v332_v10 = vld [vmem:[#allocation6 + $0x50] sm:$0xff] }
  0x54   :  { %v575_v2 = vpack.c.bf16 %v329_v0, %v327_v63  ;;  %574 = vmatpush1.bf16.msra.mxu0 %v573_v1  ;;  %v581_v13 = vpack.c.bf16 %v332_v10, %v330_v9  ;;  %v334_v15 = vld [vmem:[#allocation6 + $0x60] sm:$0xff]  ;;  %v336_v16 = vld [vmem:[#allocation6 + $0x70] sm:$0xff]  ;;  %v367_v59 = vld [vmem:[#allocation6 + $0x168] sm:$0xff] }
  0x55   :  { %v585_v19 = vpack.c.bf16 %v336_v16, %v334_v15  ;;  %v338_v21 = vld [vmem:[#allocation6 + $0x80] sm:$0xff]  ;;  %v340_v22 = vld [vmem:[#allocation6 + $0x90] sm:$0xff]  ;;  %v369_v60 = vld [vmem:[#allocation6 + $0x178] sm:$0xff] }
  0x56   :  { %534 = vmatpush1.bf16.msra.mxu1 %v533_v5  ;;  %v331_v5 = vld [vmem:[#allocation6 + $0x48] sm:$0xff]  ;;  %576 = vmatprep.subr.bf16.mxu0 %v575_v2  ;;  %v589_v25 = vpack.c.bf16 %v340_v22, %v338_v21  ;;  %v342_v27 = vld [vmem:[#allocation6 + $0xa0] sm:$0xff]  ;;  %v344_v28 = vld [vmem:[#allocation6 + $0xb0] sm:$0xff]  ;;  %v615_v62 = vpack.c.bf16 %v369_v60, %v367_v59 }
  0x57   :  { %536 = vmatprep.subr.bf16.mxu1 %v535_v6  ;;  %v333_v6 = vld [vmem:[#allocation6 + $0x58] sm:$0xff]  ;;  %v593_v31 = vpack.c.bf16 %v344_v28, %v342_v27  ;;  %v346_v33 = vld [vmem:[#allocation6 + $0xc0] sm:$0xff]  ;;  %v348_v34 = vld [vmem:[#allocation6 + $0xd0] sm:$0xff] }
  0x58   :  { %v579_v8 = vpack.c.bf16 %v333_v6, %v331_v5  ;;  %578 = vmatpush1.bf16.msra.mxu0 %v577_v7  ;;  %v597_v37 = vpack.c.bf16 %v348_v34, %v346_v33  ;;  %v350_v39 = vld [vmem:[#allocation6 + $0xe0] sm:$0xff]  ;;  %v352_v40 = vld [vmem:[#allocation6 + $0xf0] sm:$0xff]  ;;  %v371_v1 = vld [vmem:[#allocation6 + $0x188] sm:$0xff] }
  0x59   :  { %v601_v43 = vpack.c.bf16 %v352_v40, %v350_v39  ;;  %v354_v45 = vld [vmem:[#allocation6 + $0x100] sm:$0xff]  ;;  %v356_v46 = vld [vmem:[#allocation6 + $0x110] sm:$0xff]  ;;  %v373_v2 = vld [vmem:[#allocation6 + $0x198] sm:$0xff] }
  0x5a   :  { %538 = vmatpush1.bf16.msra.mxu1 %v537_v11  ;;  %v335_v11 = vld [vmem:[#allocation6 + $0x68] sm:$0xff]  ;;  %580 = vmatprep.subr.bf16.mxu0 %v579_v8  ;;  %v605_v49 = vpack.c.bf16 %v356_v46, %v354_v45  ;;  %v360_v52 = vld [vmem:[#allocation6 + $0x130] sm:$0xff]  ;;  %v366_v63 = vld [vmem:[#allocation6 + $0x160] sm:$0xff]  ;;  %v619_v4 = vpack.c.bf16 %v373_v2, %v371_v1 }
  0x5b   :  { %540 = vmatprep.subr.bf16.mxu1 %v539_v12  ;;  %v337_v12 = vld [vmem:[#allocation6 + $0x78] sm:$0xff]  ;;  %v364_v58 = vld [vmem:[#allocation6 + $0x150] sm:$0xff]  ;;  %v370_v5 = vld [vmem:[#allocation6 + $0x180] sm:$0xff] }
  0x5c   :  { %v583_v14 = vpack.c.bf16 %v337_v12, %v335_v11  ;;  %582 = vmatpush1.bf16.msra.mxu0 %v581_v13  ;;  %v368_v0 = vld [vmem:[#allocation6 + $0x170] sm:$0xff]  ;;  %v375_v7 = vld [vmem:[#allocation6 + $0x1a8] sm:$0xff]  ;;  %v377_v8 = vld [vmem:[#allocation6 + $0x1b8] sm:$0xff] }
  0x5d   :  { %v617_v3 = vpack.c.bf16 %v368_v0, %v366_v63  ;;  %v372_v6 = vld [vmem:[#allocation6 + $0x190] sm:$0xff]  ;;  %v623_v10 = vpack.c.bf16 %v377_v8, %v375_v7  ;;  %v374_v11 = vld [vmem:[#allocation6 + $0x1a0] sm:$0xff]  ;;  %v379_v13 = vld [vmem:[#allocation6 + $0x1c8] sm:$0xff] }
  0x5e   :  { %542 = vmatpush1.bf16.msra.mxu1 %v541_v17  ;;  %v339_v17 = vld [vmem:[#allocation6 + $0x88] sm:$0xff]  ;;  %584 = vmatprep.subr.bf16.mxu0 %v583_v14  ;;  %v621_v9 = vpack.c.bf16 %v372_v6, %v370_v5  ;;  %v376_v12 = vld [vmem:[#allocation6 + $0x1b0] sm:$0xff]  ;;  %v381_v14 = vld [vmem:[#allocation6 + $0x1d8] sm:$0xff] }
  0x5f   :  { %544 = vmatprep.subr.bf16.mxu1 %v543_v18  ;;  %v341_v18 = vld [vmem:[#allocation6 + $0x98] sm:$0xff]  ;;  %v625_v15 = vpack.c.bf16 %v376_v12, %v374_v11  ;;  %v627_v16 = vpack.c.bf16 %v381_v14, %v379_v13  ;;  %v383_v33 = vld [vmem:[#allocation6 + $0x1e8] sm:$0xff]  ;;  %v237_v39 = vld [vmem:[%s828_s4] sm:$0x3] }
  0x60   :  { %v587_v20 = vpack.c.bf16 %v341_v18, %v339_v17  ;;  %586 = vmatpush1.bf16.msra.mxu0 %v585_v19  ;;  %v86_v17 = vlaneseq  ;;  %v385_v34 = vld [vmem:[#allocation6 + $0x1f8] sm:$0xff] }
  0x62   :  { %546 = vmatpush1.bf16.msra.mxu1 %v545_v23  ;;  %v343_v23 = vld [vmem:[#allocation6 + $0xa8] sm:$0xff]  ;;  %588 = vmatprep.subr.bf16.mxu0 %v587_v20  ;;  %v87_v18 = vshrl.u32 %v86_v17, 7  ;;  %v84_v20 = vld [vmem:[%s826_s2] sm:$0x3] }
  0x63   :  { %548 = vmatprep.subr.bf16.mxu1 %v547_v24  ;;  %v345_v24 = vld [vmem:[#allocation6 + $0xb8] sm:$0xff] }
  0x64   :  { %v591_v26 = vpack.c.bf16 %v345_v24, %v343_v23  ;;  %590 = vmatpush1.bf16.msra.mxu0 %v589_v25  ;;  %v88_v19 = vsub.s32 0, %v87_v18  ;;  %v92_v21 = vsub.s32 1, %v87_v18 }
  0x66   :  { %550 = vmatpush1.bf16.msra.mxu1 %v549_v29  ;;  %v347_v29 = vld [vmem:[#allocation6 + $0xc8] sm:$0xff]  ;;  %592 = vmatprep.subr.bf16.mxu0 %v591_v26  ;;  %v89_v22 = vrot.slane %v84_v20, %v88_v19  ;;  %v93_v23 = vrot.slane %v84_v20, %v92_v21  ;;  %v242_v40 = vrot.slane %v237_v39, %v88_v19 }
  0x67   :  { %552 = vmatprep.subr.bf16.mxu1 %v551_v30  ;;  %v349_v30 = vld [vmem:[#allocation6 + $0xd8] sm:$0xff] }
  0x68   :  { %v595_v32 = vpack.c.bf16 %v349_v30, %v347_v29  ;;  %594 = vmatpush1.bf16.msra.mxu0 %v593_v31  ;;  %v378_v30 = vld [vmem:[#allocation6 + $0x1c0] sm:$0xff]  ;;  %v380_v31 = vld [vmem:[#allocation6 + $0x1d0] sm:$0xff] }
  0x6a   :  { %554 = vmatpush1.bf16.msra.mxu1 %v553_v35  ;;  %v351_v35 = vld [vmem:[#allocation6 + $0xe8] sm:$0xff]  ;;  %596 = vmatprep.subr.bf16.mxu0 %v595_v32  ;;  %v629_v32 = vpack.c.bf16 %v380_v31, %v378_v30 }
  0x6b   :  { %556 = vmatprep.subr.bf16.mxu1 %v555_v36  ;;  %v353_v36 = vld [vmem:[#allocation6 + $0xf8] sm:$0xff] }
  0x6c   :  { %v599_v38 = vpack.c.bf16 %v353_v36, %v351_v35  ;;  %598 = vmatpush1.bf16.msra.mxu0 %v597_v37  ;;  %v631_v35 = vpack.c.bf16 %v385_v34, %v383_v33  ;;  %v382_v36 = vld [vmem:[#allocation6 + $0x1e0] sm:$0xff]  ;;  %v384_v37 = vld [vmem:[#allocation6 + $0x1f0] sm:$0xff] }
  0x6e   :  { %558 = vmatpush1.bf16.msra.mxu1 %v557_v41  ;;  %v355_v41 = vld [vmem:[#allocation6 + $0x108] sm:$0xff]  ;;  %600 = vmatprep.subr.bf16.mxu0 %v599_v38  ;;  %v633_v38 = vpack.c.bf16 %v384_v37, %v382_v36 }
  0x6f   :  { %560 = vmatprep.subr.bf16.mxu1 %v559_v42  ;;  %v357_v42 = vld [vmem:[#allocation6 + $0x118] sm:$0xff] }
  0x70   :  { %v603_v44 = vpack.c.bf16 %v357_v42, %v355_v41  ;;  %602 = vmatpush1.bf16.msra.mxu0 %v601_v43  ;;  %v246_v41 = vrot.slane %v237_v39, %v92_v21 }
  0x72   :  { %562 = vmatpush1.bf16.msra.mxu1 %v561_v47  ;;  %v359_v47 = vld [vmem:[#allocation6 + $0x128] sm:$0xff]  ;;  %604 = vmatprep.subr.bf16.mxu0 %v603_v44 }
  0x73   :  { %564 = vmatprep.subr.bf16.mxu1 %v563_v48  ;;  %v361_v48 = vld [vmem:[#allocation6 + $0x138] sm:$0xff] }
  0x74   :  { %v607_v50 = vpack.c.bf16 %v361_v48, %v359_v47  ;;  %606 = vmatpush1.bf16.msra.mxu0 %v605_v49  ;;  %v386_v48 = vld [vmem:[%s830_s6] sm:$0x3] }
  0x75   :  { %v391_v49 = vrot.slane %v386_v48, %v88_v19 }
  0x76   :  { %566 = vmatpush1.bf16.msra.mxu1 %v565_v51  ;;  %v358_v51 = vld [vmem:[#allocation6 + $0x120] sm:$0xff]  ;;  %608 = vmatprep.subr.bf16.mxu0 %v607_v50  ;;  %v395_v50 = vrot.slane %v386_v48, %v92_v21 }
  0x77   :  { %568 = vmatprep.subr.bf16.mxu1 %v567_v54  ;;  %v365_v54 = vld [vmem:[#allocation6 + $0x158] sm:$0xff]  ;;  %v609_v55 = vpack.c.bf16 %v360_v52, %v358_v51 }
  0x78   :  { %v611_v56 = vpack.c.bf16 %v365_v54, %v363_v53 }
  0x79   :  { %610 = vmatpush1.bf16.msra.mxu0 %v609_v55 }
  0x7a   :  { %570 = vmatpush1.bf16.msra.mxu1 %v569_v57  ;;  %v362_v57 = vld [vmem:[#allocation6 + $0x140] sm:$0xff]  ;;  %612 = vmatprep.subr.bf16.mxu0 %v611_v56 }
  0x7b   :  { %v613_v61 = vpack.c.bf16 %v364_v58, %v362_v57 }
  0x7d   :  { %614 = vmatpush1.bf16.msra.mxu0 %v613_v61 }
  0x7e   :  { %616 = vmatprep.subr.bf16.mxu0 %v615_v62 }
  0x81   :  { %618 = vmatpush1.bf16.msra.mxu0 %v617_v3 }
  0x82   :  { %620 = vmatprep.subr.bf16.mxu0 %v619_v4 }
  0x85   :  { %622 = vmatpush1.bf16.msra.mxu0 %v621_v9 }
  0x86   :  { %624 = vmatprep.subr.bf16.mxu0 %v623_v10 }
  0x89   :  { %626 = vmatpush1.bf16.msra.mxu0 %v625_v15 }
  0x8a   :  { %628 = vmatprep.subr.bf16.mxu0 %v627_v16 }
  0x8d   :  { %630 = vmatpush1.bf16.msra.mxu0 %v629_v32 }
  0x8e   :  { %632 = vmatprep.subr.bf16.mxu0 %v631_v35 }
  0x91   :  { %634 = vmatpush1.bf16.msra.mxu0 %v633_v38 }
 0x11b   :  { %v166_v24 = vpop.f32.mrb[0].mxu0 }
 0x11c   :  { %v167_v25 = vadd.f32 %v166_v24, %v89_v22  ;;  %v168_v26 = vpop.f32.mrb[1].mxu0 }
 0x11d   :  { %v169_v27 = vadd.f32 %v168_v26, %v93_v23 }
 0x11e   :  { %v171_v29 = vmax.f32 %v167_v25, 0.0 }
 0x11f   :  { %v172_v28 = vmax.f32 %v169_v27, 0.0 }
 0x121   :  { %313 = vmatprep.mubr.f32.mxu1 %v172_v28 }
 0x122   :  { %314 = vmatmul.mubr.f32.vlgmr.msra.gmra.mrb[0].mxu1 %v171_v29 }
 0x1f5   :  { %v315_v42 = vpop.f32.mrb[0].mxu1 }
 0x1f6   :  { %v316_v43 = vadd.f32 %v315_v42, %v242_v40  ;;  %v317_v44 = vpop.f32.mrb[1].mxu1 }
 0x1f7   :  { %v318_v45 = vadd.f32 %v317_v44, %v246_v41 }
 0x1f8   :  { %v320_v47 = vmax.f32 %v316_v43, 0.0 }
 0x1f9   :  { %v321_v46 = vmax.f32 %v318_v45, 0.0 }
 0x1fb   :  { %462 = vmatprep.mubr.f32.mxu0 %v321_v46 }
 0x1fc   :  { %463 = vmatmul.mubr.f32.vlgmr.msra.gmra.mrb[2].mxu0 %v320_v47 }
 0x2cf   :  { %v464_v51 = vpop.f32.mrb[2].mxu0 }
 0x2d0   :  { %v465_v52 = vadd.f32 %v464_v51, %v391_v49  ;;  %v466_v53 = vpop.f32.mrb[3].mxu0 }
 0x2d1   :  { %v467_v54 = vadd.f32 %v466_v53, %v395_v50 }
 0x2d2   :  { %v469_v55 = vmax.f32 %v465_v52, 0.0 }
 0x2d3   :  { %v470_v56 = vmax.f32 %v467_v54, 0.0 }
 0x2d5   :  { %v473_v57 = vcombine.low %v469_v55, %v470_v56 }
 0x2d7   :  { %490 = vst.sshfl [vmem:[%s831_s7] sm:$0x33 pattern:$0x76325410] %v473_v57 }
 0x2d8   :  { %487 = vsyncpa [#allocation3], 1 }
 0x2d9   :  { %488 = vsyncpa [#allocation5], 1 }

</bundles_post_ra>
